<compile_context>
chip_gen: v6e
topology: v6e:2x2x1
jax: 0.10.0
libtpu: 0.0.40
codegen_flags: <defaults>
</compile_context>

<pallas_src>
import functools

import jax
import jax.numpy as jnp
from jax.experimental import pallas as pl
from jax.experimental.pallas import tpu as pltpu

NEG_SLOPE = 0.01  # nn.LeakyReLU default negative_slope


def _leaky_relu(x):
    return jnp.where(x >= 0, x, NEG_SLOPE * x)


def _round_up(n, m):
    return ((n + m - 1) // m) * m


def _pad_axis(a, axis, size):
    pad = size - a.shape[axis]
    if pad <= 0:
        return a
    widths = [(0, 0)] * a.ndim
    widths[axis] = (0, pad)
    return jnp.pad(a, widths)


# ---------------------------------------------------------------------------
# Kernel
# ---------------------------------------------------------------------------
def _pixel_generator_kernel(x_ref, w_in_ref, b_all_ref, w_hid_ref, w_out_ref,
                            b_out_ref, o_ref, h_ref, *, hidden_layers):
    """One row tile of the whole MLP.

    x_ref     : (tile_n, F)     bf16  input rows
    w_in_ref  : (F, Kp)         bf16  inner weight + (+I | -I) x-slot columns
    b_all_ref : (L+1, 1, Kp)    f32   [b_in ; b_hid[0..L-1]] (zero-padded)
    w_hid_ref : (Lw, Kp, Kp)    bf16  augmented hidden weights
    w_out_ref : (Kp, Op)        bf16  augmented outer weight
    b_out_ref : (1, Op)         f32   outer bias (zero-padded)
    o_ref     : (tile_n, Op)    f32   padded output rows
    h_ref     : (tile_n, Kp)    bf16  scratch: [h | phi(x) | phi(-x) | 0]
    """
    x = x_ref[...]

    # inner: Linear(F -> H) + LeakyReLU.  The same skinny (K = F) matmul also
    # seeds the two x pass-through slots (+I / -I columns); the full-width
    # LeakyReLU then turns them into A = phi(x), B = phi(-x) for free.
    z = (jnp.dot(x, w_in_ref[...], preferred_element_type=jnp.float32)
         + b_all_ref[0])
    h_ref[...] = _leaky_relu(z).astype(h_ref.dtype)

    # hidden layers: Linear(H + F -> H) + LeakyReLU, each ONE
    # (tile_n, Kp) @ (Kp, Kp) MXU pass.  The x contribution is carried by the
    # A/B slots (rows pre-scaled by +-1/(1+slope)); identity pass-through
    # blocks regenerate A/B for the next layer.  Statically unrolled (L <= 8).
    for i in range(hidden_layers):
        z = (jnp.dot(h_ref[...], w_hid_ref[i],
                     preferred_element_type=jnp.float32)
             + b_all_ref[i + 1])
        h_ref[...] = _leaky_relu(z).astype(h_ref.dtype)

    # outer: Linear(H + F -> out), no activation
    out = (jnp.dot(h_ref[...], w_out_ref[...],
                   preferred_element_type=jnp.float32)
           + b_out_ref[...])
    o_ref[...] = out.astype(o_ref.dtype)


# ---------------------------------------------------------------------------
# Host-side weight packing (one-time XLA glue, outside the kernel)
# ---------------------------------------------------------------------------
def _pack_params(params, f, hidden_layers):
    """Pack PyTorch-style weights into the augmented bf16 layout.

    Column layout of the augmented activation (width Kp):
        [0:H)       hidden activation
        [H:H+F)     A = LeakyReLU(x)
        [H+F:H+2F)  B = LeakyReLU(-x)
        [H+2F:Kp)   zero padding
    Since A - B == (1 + slope) * x, the "input half" of cat([prev, x]) weights
    is folded into rows [H:H+2F) with scale +-1/(1+slope), and +-1/(1+slope)
    identity blocks keep A/B alive across the per-layer LeakyReLU.  For the
    production config (H=700, F=8) this all fits inside the existing 128-lane
    padding (Kp=768), i.e. the x path costs zero extra MXU passes.
    """
    w_in, b_in = params["w_in"], params["b_in"]        # (F,H), (H,)
    w_hid, b_hid = params["w_hid"], params["b_hid"]    # (L,H+F,H), (L,H)
    w_out, b_out = params["w_out"], params["b_out"]    # (H+F,O), (O,)

    H = w_in.shape[1]
    O = w_out.shape[1]
    L = hidden_layers
    c = 1.0 / (1.0 + NEG_SLOPE)

    k_pad = _round_up(H + 2 * f, 128)
    out_pad = _round_up(O, 128)
    eye = jnp.eye(f, dtype=jnp.float32)

    # inner weight: (F, Kp)
    w_in_aug = jnp.zeros((f, k_pad), jnp.float32)
    w_in_aug = w_in_aug.at[:, :H].set(w_in)
    w_in_aug = w_in_aug.at[:, H:H + f].set(eye)            # A slot:  x
    w_in_aug = w_in_aug.at[:, H + f:H + 2 * f].set(-eye)   # B slot: -x

    # hidden weights: (Lw, Kp, Kp)
    l_w = max(L, 1)
    wh_aug = jnp.zeros((l_w, k_pad, k_pad), jnp.float32)
    if L > 0:
        prev_part = w_hid[:, :H, :]                        # (L, H, H)
        in_part = w_hid[:, H:, :]                          # (L, F, H)
        wh_aug = wh_aug.at[:L, :H, :H].set(prev_part)
        wh_aug = wh_aug.at[:L, H:H + f, :H].set(c * in_part)
        wh_aug = wh_aug.at[:L, H + f:H + 2 * f, :H].set(-c * in_part)
        # pass-through blocks: z_A' = c*(A-B) = x, z_B' = -x
        wh_aug = wh_aug.at[:L, H:H + f, H:H + f].set(c * eye)
        wh_aug = wh_aug.at[:L, H + f:H + 2 * f, H:H + f].set(-c * eye)
        wh_aug = wh_aug.at[:L, H:H + f, H + f:H + 2 * f].set(-c * eye)
        wh_aug = wh_aug.at[:L, H + f:H + 2 * f, H + f:H + 2 * f].set(c * eye)

    # outer weight: (Kp, Op)
    wo_aug = jnp.zeros((k_pad, out_pad), jnp.float32)
    wo_aug = wo_aug.at[:H, :O].set(w_out[:H, :])
    wo_aug = wo_aug.at[H:H + f, :O].set(c * w_out[H:, :])
    wo_aug = wo_aug.at[H + f:H + 2 * f, :O].set(-c * w_out[H:, :])

    # biases (kept f32): (L+1, 1, Kp) and (1, Op)
    b_all = jnp.zeros((L + 1, 1, k_pad), jnp.float32)
    b_all = b_all.at[0, 0, :H].set(b_in)
    if L > 0:
        b_all = b_all.at[1:, 0, :H].set(b_hid)
    b_out_p = jnp.zeros((1, out_pad), jnp.float32).at[0, :O].set(b_out)

    return (w_in_aug.astype(jnp.bfloat16), b_all,
            wh_aug.astype(jnp.bfloat16), wo_aug.astype(jnp.bfloat16),
            b_out_p, k_pad, out_pad)


# ---------------------------------------------------------------------------
# Buffered(1) support probe (lower/compile once; never executed)
# ---------------------------------------------------------------------------
@functools.lru_cache(maxsize=None)
def _single_buffer_weight_mode():
    """Return pl.Buffered(1) if this Pallas build accepts single-buffered
    constant-index input blocks, else None (default double buffering)."""
    try:
        mode = pl.Buffered(1)

        def _probe(w_ref, o_ref):
            o_ref[...] = w_ref[...] + 1.0

        probe = pl.pallas_call(
            _probe,
            out_shape=jax.ShapeDtypeStruct((16, 128), jnp.float32),
            grid_spec=pltpu.PrefetchScalarGridSpec(
                num_scalar_prefetch=0,
                grid=(2,),
                in_specs=[pl.BlockSpec((8, 128), lambda i: (0, 0),
                                       pipeline_mode=mode)],
                out_specs=pl.BlockSpec((8, 128), lambda i: (i, 0)),
            ),
        )
        jax.jit(probe).lower(
            jax.ShapeDtypeStruct((8, 128), jnp.float32)).compile()
        return mode
    except Exception:  # pragma: no cover - depends on installed jax/Mosaic
        return None


# ---------------------------------------------------------------------------
# pallas_call builder + wrapper
# ---------------------------------------------------------------------------
def _build_pallas_fn(*, n_pad, f, k_pad, out_pad, hidden_layers, l_weights,
                     tile_n, weight_mode):
    kernel = functools.partial(_pixel_generator_kernel,
                               hidden_layers=hidden_layers)

    def wspec(shape):
        if len(shape) == 2:
            idx = lambda i: (0, 0)
        else:
            idx = lambda i: (0, 0, 0)
        if weight_mode is None:
            return pl.BlockSpec(shape, idx)
        return pl.BlockSpec(shape, idx, pipeline_mode=weight_mode)

    return pl.pallas_call(
        kernel,
        out_shape=jax.ShapeDtypeStruct((n_pad, out_pad), jnp.float32),
        grid_spec=pltpu.PrefetchScalarGridSpec(
            num_scalar_prefetch=0,
            grid=(n_pad // tile_n,),
            in_specs=[
                pl.BlockSpec((tile_n, f), lambda i: (i, 0)),   # x rows
                wspec((f, k_pad)),                             # w_in_aug
                wspec((hidden_layers + 1, 1, k_pad)),          # b_all
                wspec((l_weights, k_pad, k_pad)),              # w_hid_aug
                wspec((k_pad, out_pad)),                       # w_out_aug
                wspec((1, out_pad)),                           # b_out
            ],
            out_specs=pl.BlockSpec((tile_n, out_pad), lambda i: (i, 0)),
            scratch_shapes=[pltpu.VMEM((tile_n, k_pad), jnp.bfloat16)],
        ),
        compiler_params=pltpu.CompilerParams(
            dimension_semantics=("parallel",),   # shards row tiles on v7x 2-TC
            vmem_limit_bytes=48 * 1024 * 1024,   # < v7x 64 MiB physical VMEM
        ),
    )


def pixel_generator_pallas(x, params, *, hidden_layers, tile_n=512):
    """Forward pass of PixelGenerator.

    x      : [..., buffers_features + variables_features] (channels-last; the
             PyTorch module concatenates on dim=3 of a [B, H, W, C] tensor).
    params : weights stored as (in_features, out_features) = torch W.T.
    Returns [..., out_features] float32.
    """
    *lead, f = x.shape
    n = 1
    for d in lead:
        n *= d
    x_rows = x.reshape(n, f).astype(jnp.bfloat16)   # direct bf16 cast

    (w_in_aug, b_all, wh_aug, wo_aug, b_out_p,
     k_pad, out_pad) = _pack_params(params, f, hidden_layers)
    out_f = params["w_out"].shape[1]

    # clamp the row tile for small inputs; pad rows so the grid divides evenly
    tile_n = max(8, min(tile_n, _round_up(max(n, 1), 8)))
    n_pad = _round_up(max(n, 1), tile_n)
    x_rows = _pad_axis(x_rows, 0, n_pad)

    fn = _build_pallas_fn(
        n_pad=n_pad, f=f, k_pad=k_pad, out_pad=out_pad,
        hidden_layers=hidden_layers, l_weights=wh_aug.shape[0],
        tile_n=tile_n, weight_mode=_single_buffer_weight_mode())
    out_padded = fn(x_rows, w_in_aug, b_all, wh_aug, wo_aug, b_out_p)

    out = out_padded[:n, :out_f]
    return out.reshape(*lead, out_f)


# ---------------------------------------------------------------------------
# Pure-JAX reference + synthetic params
# ---------------------------------------------------------------------------
def pixel_generator_reference(x, params, *, hidden_layers,
                              mxu_dtype=jnp.float32):
    """Pure-JAX replica of the PyTorch forward (exact f32 module math by
    default)."""
    def mm(a, b):
        return jnp.dot(a.astype(mxu_dtype), b.astype(mxu_dtype),
                       preferred_element_type=jnp.float32)

    x_flat = x.reshape(-1, x.shape[-1]).astype(jnp.float32)
    h = _leaky_relu(mm(x_flat, params["w_in"]) + params["b_in"])
    for i in range(hidden_layers):
        cat = jnp.concatenate([h, x_flat], axis=-1)
        h = _leaky_relu(mm(cat, params["w_hid"][i]) + params["b_hid"][i])
    cat = jnp.concatenate([h, x_flat], axis=-1)
    out = mm(cat, params["w_out"]) + params["b_out"]
    return out.reshape(*x.shape[:-1], out.shape[-1])


def init_params(key, buffers_features, variables_features,
                out_features, hidden_features, hidden_layers):
    """Deterministic synthetic init, PyTorch-Linear-style uniform(+-1/sqrt(fan_in)).
    Weights stored as (in_features, out_features), i.e. torch W.T."""
    F = buffers_features + variables_features
    H = hidden_features
    keys = jax.random.split(key, 6)

    def u(k, shape, fan_in):
        b = 1.0 / jnp.sqrt(jnp.float32(fan_in))
        return jax.random.uniform(k, shape, jnp.float32, -b, b)

    return {
        "w_in": u(keys[0], (F, H), F),
        "b_in": u(keys[1], (H,), F),
        "w_hid": u(keys[2], (hidden_layers, H + F, H), H + F),
        "b_hid": u(keys[3], (hidden_layers, H), H + F),
        "w_out": u(keys[4], (H + F, out_features), H + F),
        "b_out": u(keys[5], (out_features,), H + F),
    }


if __name__ == "__main__":
    # small shapes consistent with the module (real defaults: hidden=700, layers=8)
    B, Hs, Ws = 2, 8, 8
    buffers_features, variables_features = 4, 4
    out_features = 3
    hidden_features = 32
    hidden_layers = 2

    F = buffers_features + variables_features
    key = jax.random.PRNGKey(0)
    k_x, k_p = jax.random.split(key)

    # input: [B, H, W, buffers+variables]  (channels-last, torch cat dim=3)
    x = jax.random.normal(k_x, (B, Hs, Ws, F), dtype=jnp.float32)
    params = init_params(k_p, buffers_features, variables_features,
                         out_features, hidden_features, hidden_layers)

    out = pixel_generator_pallas(x, params, hidden_layers=hidden_layers)
    out = jax.block_until_ready(out)
    assert out.shape == (B, Hs, Ws, out_features)

    # check vs exact f32 module math (bf16 MXU-operand rounding only)
    ref = pixel_generator_reference(x, params, hidden_layers=hidden_layers,
                                    mxu_dtype=jnp.float32)
    max_err = float(jnp.max(jnp.abs(out - ref)))
    assert jnp.allclose(out, ref, rtol=3e-2, atol=3e-2), \
        f"mismatch vs f32 reference (max abs err {max_err})"

    print("KERNEL_OK")
</pallas_src>

<mosaic_0001>
module attributes {stable_mosaic.version = 11 : i64} {
  func.func @_pixel_generator_kernel(%arg0: i32, %arg1: memref<128x8xbf16, #tpu.memory_space<vmem>>, %arg2: memref<8x128xbf16, #tpu.memory_space<vmem>>, %arg3: memref<3x1x128xf32, #tpu.memory_space<vmem>>, %arg4: memref<2x128x128xbf16, #tpu.memory_space<vmem>>, %arg5: memref<128x128xbf16, #tpu.memory_space<vmem>>, %arg6: memref<1x128xf32, #tpu.memory_space<vmem>>, %arg7: memref<128x128xf32, #tpu.memory_space<vmem>>, %arg8: memref<128x128xbf16, #tpu.memory_space<vmem>>) attributes {dimension_semantics = [#tpu.dimension_semantics<parallel>], iteration_bounds = array<i64: 1>, scalar_prefetch = 0 : i64, scratch_operands = 1 : i64, tpu.core_type = #tpu.core_type<tc>, window_params = [{transform_indices = @transform_0, window_bounds = array<i64: 128, 8>}, {pipeline_mode = #tpu.pipeline_mode<synchronous>, transform_indices = @transform_1, window_bounds = array<i64: 8, 128>}, {pipeline_mode = #tpu.pipeline_mode<synchronous>, transform_indices = @transform_2, window_bounds = array<i64: 3, 1, 128>}, {pipeline_mode = #tpu.pipeline_mode<synchronous>, transform_indices = @transform_3, window_bounds = array<i64: 2, 128, 128>}, {pipeline_mode = #tpu.pipeline_mode<synchronous>, transform_indices = @transform_4, window_bounds = array<i64: 128, 128>}, {pipeline_mode = #tpu.pipeline_mode<synchronous>, transform_indices = @transform_5, window_bounds = array<i64: 1, 128>}, {transform_indices = @transform_6, window_bounds = array<i64: 128, 128>}]} {
    %c0 = arith.constant 0 : index
    %c0_0 = arith.constant 0 : index
    %0 = vector.load %arg1[%c0, %c0_0] : memref<128x8xbf16, #tpu.memory_space<vmem>>, vector<128x8xbf16>
    %c0_1 = arith.constant 0 : index
    %c0_2 = arith.constant 0 : index
    %1 = vector.load %arg2[%c0_1, %c0_2] : memref<8x128xbf16, #tpu.memory_space<vmem>>, vector<8x128xbf16>
    %cst = arith.constant dense<0.000000e+00> : vector<128x128xf32>
    %2 = tpu.matmul %0, %1, %cst {dimension_numbers = #tpu.dot_dimension_numbers<[1], [0], [0], [1], [0, 0, 1, 1], [], []>} : vector<128x8xbf16>, vector<8x128xbf16>, vector<128x128xf32> -> vector<128x128xf32>
    %c0_3 = arith.constant 0 : index
    %c0_4 = arith.constant 0 : index
    %c0_5 = arith.constant 0 : index
    %3 = vector.load %arg3[%c0_3, %c0_4, %c0_5] : memref<3x1x128xf32, #tpu.memory_space<vmem>>, vector<1x1x128xf32>
    %4 = vector.shape_cast %3 : vector<1x1x128xf32> to vector<1x128xf32>
    %5 = vector.broadcast %4 : vector<1x128xf32> to vector<128x128xf32>
    %6 = arith.addf %2, %5 : vector<128x128xf32>
    %cst_6 = arith.constant 0.000000e+00 : f32
    %7 = vector.broadcast %cst_6 : f32 to vector<128x128xf32>
    %8 = arith.cmpf oge, %6, %7 : vector<128x128xf32>
    %cst_7 = arith.constant 0.00999999977 : f32
    %9 = vector.broadcast %cst_7 : f32 to vector<128x128xf32>
    %10 = arith.mulf %9, %6 : vector<128x128xf32>
    %11 = arith.select %8, %6, %10 : vector<128x128xi1>, vector<128x128xf32>
    %12 = arith.truncf %11 : vector<128x128xf32> to vector<128x128xbf16>
    %c0_8 = arith.constant 0 : index
    %c0_9 = arith.constant 0 : index
    %13 = vector.load %arg8[%c0_8, %c0_9] : memref<128x128xbf16, #tpu.memory_space<vmem>>, vector<128x128xbf16>
    tpu.vector_store %arg8[%c0_8, %c0_9], %12 {strides = array<i32>} : memref<128x128xbf16, #tpu.memory_space<vmem>>, vector<128x128xbf16>,
    %c0_10 = arith.constant 0 : index
    %c0_11 = arith.constant 0 : index
    %14 = vector.load %arg8[%c0_10, %c0_11] : memref<128x128xbf16, #tpu.memory_space<vmem>>, vector<128x128xbf16>
    %c0_12 = arith.constant 0 : index
    %c0_13 = arith.constant 0 : index
    %c0_14 = arith.constant 0 : index
    %15 = vector.load %arg4[%c0_12, %c0_13, %c0_14] : memref<2x128x128xbf16, #tpu.memory_space<vmem>>, vector<1x128x128xbf16>
    %16 = vector.shape_cast %15 : vector<1x128x128xbf16> to vector<128x128xbf16>
    %cst_15 = arith.constant dense<0.000000e+00> : vector<128x128xf32>
    %17 = tpu.matmul %14, %16, %cst_15 {dimension_numbers = #tpu.dot_dimension_numbers<[1], [0], [0], [1], [0, 0, 1, 1], [], []>} : vector<128x128xbf16>, vector<128x128xbf16>, vector<128x128xf32> -> vector<128x128xf32>
    %c1 = arith.constant 1 : index
    %c0_16 = arith.constant 0 : index
    %c0_17 = arith.constant 0 : index
    %18 = vector.load %arg3[%c1, %c0_16, %c0_17] : memref<3x1x128xf32, #tpu.memory_space<vmem>>, vector<1x1x128xf32>
    %19 = vector.shape_cast %18 : vector<1x1x128xf32> to vector<1x128xf32>
    %20 = vector.broadcast %19 : vector<1x128xf32> to vector<128x128xf32>
    %21 = arith.addf %17, %20 : vector<128x128xf32>
    %cst_18 = arith.constant 0.000000e+00 : f32
    %22 = vector.broadcast %cst_18 : f32 to vector<128x128xf32>
    %23 = arith.cmpf oge, %21, %22 : vector<128x128xf32>
    %cst_19 = arith.constant 0.00999999977 : f32
    %24 = vector.broadcast %cst_19 : f32 to vector<128x128xf32>
    %25 = arith.mulf %24, %21 : vector<128x128xf32>
    %26 = arith.select %23, %21, %25 : vector<128x128xi1>, vector<128x128xf32>
    %27 = arith.truncf %26 : vector<128x128xf32> to vector<128x128xbf16>
    %c0_20 = arith.constant 0 : index
    %c0_21 = arith.constant 0 : index
    %28 = vector.load %arg8[%c0_20, %c0_21] : memref<128x128xbf16, #tpu.memory_space<vmem>>, vector<128x128xbf16>
    tpu.vector_store %arg8[%c0_20, %c0_21], %27 {strides = array<i32>} : memref<128x128xbf16, #tpu.memory_space<vmem>>, vector<128x128xbf16>,
    %c0_22 = arith.constant 0 : index
    %c0_23 = arith.constant 0 : index
    %29 = vector.load %arg8[%c0_22, %c0_23] : memref<128x128xbf16, #tpu.memory_space<vmem>>, vector<128x128xbf16>
    %c1_24 = arith.constant 1 : index
    %c0_25 = arith.constant 0 : index
    %c0_26 = arith.constant 0 : index
    %30 = vector.load %arg4[%c1_24, %c0_25, %c0_26] : memref<2x128x128xbf16, #tpu.memory_space<vmem>>, vector<1x128x128xbf16>
    %31 = vector.shape_cast %30 : vector<1x128x128xbf16> to vector<128x128xbf16>
    %cst_27 = arith.constant dense<0.000000e+00> : vector<128x128xf32>
    %32 = tpu.matmul %29, %31, %cst_27 {dimension_numbers = #tpu.dot_dimension_numbers<[1], [0], [0], [1], [0, 0, 1, 1], [], []>} : vector<128x128xbf16>, vector<128x128xbf16>, vector<128x128xf32> -> vector<128x128xf32>
    %c2 = arith.constant 2 : index
    %c0_28 = arith.constant 0 : index
    %c0_29 = arith.constant 0 : index
    %33 = vector.load %arg3[%c2, %c0_28, %c0_29] : memref<3x1x128xf32, #tpu.memory_space<vmem>>, vector<1x1x128xf32>
    %34 = vector.shape_cast %33 : vector<1x1x128xf32> to vector<1x128xf32>
    %35 = vector.broadcast %34 : vector<1x128xf32> to vector<128x128xf32>
    %36 = arith.addf %32, %35 : vector<128x128xf32>
    %cst_30 = arith.constant 0.000000e+00 : f32
    %37 = vector.broadcast %cst_30 : f32 to vector<128x128xf32>
    %38 = arith.cmpf oge, %36, %37 : vector<128x128xf32>
    %cst_31 = arith.constant 0.00999999977 : f32
    %39 = vector.broadcast %cst_31 : f32 to vector<128x128xf32>
    %40 = arith.mulf %39, %36 : vector<128x128xf32>
    %41 = arith.select %38, %36, %40 : vector<128x128xi1>, vector<128x128xf32>
    %42 = arith.truncf %41 : vector<128x128xf32> to vector<128x128xbf16>
    %c0_32 = arith.constant 0 : index
    %c0_33 = arith.constant 0 : index
    %43 = vector.load %arg8[%c0_32, %c0_33] : memref<128x128xbf16, #tpu.memory_space<vmem>>, vector<128x128xbf16>
    tpu.vector_store %arg8[%c0_32, %c0_33], %42 {strides = array<i32>} : memref<128x128xbf16, #tpu.memory_space<vmem>>, vector<128x128xbf16>,
    %c0_34 = arith.constant 0 : index
    %c0_35 = arith.constant 0 : index
    %44 = vector.load %arg8[%c0_34, %c0_35] : memref<128x128xbf16, #tpu.memory_space<vmem>>, vector<128x128xbf16>
    %c0_36 = arith.constant 0 : index
    %c0_37 = arith.constant 0 : index
    %45 = vector.load %arg5[%c0_36, %c0_37] : memref<128x128xbf16, #tpu.memory_space<vmem>>, vector<128x128xbf16>
    %cst_38 = arith.constant dense<0.000000e+00> : vector<128x128xf32>
    %46 = tpu.matmul %44, %45, %cst_38 {dimension_numbers = #tpu.dot_dimension_numbers<[1], [0], [0], [1], [0, 0, 1, 1], [], []>} : vector<128x128xbf16>, vector<128x128xbf16>, vector<128x128xf32> -> vector<128x128xf32>
    %c0_39 = arith.constant 0 : index
    %c0_40 = arith.constant 0 : index
    %47 = vector.load %arg6[%c0_39, %c0_40] : memref<1x128xf32, #tpu.memory_space<vmem>>, vector<1x128xf32>
    %48 = vector.broadcast %47 : vector<1x128xf32> to vector<128x128xf32>
    %49 = arith.addf %46, %48 : vector<128x128xf32>
    %c0_41 = arith.constant 0 : index
    %c0_42 = arith.constant 0 : index
    %50 = vector.load %arg7[%c0_41, %c0_42] : memref<128x128xf32, #tpu.memory_space<vmem>>, vector<128x128xf32>
    tpu.vector_store %arg7[%c0_41, %c0_42], %49 {strides = array<i32>} : memref<128x128xf32, #tpu.memory_space<vmem>>, vector<128x128xf32>,
    return
  }
  func.func @transform_0(%arg0: i32) -> (i32, i32) {
    %c0_i32 = arith.constant 0 : i32
    %c0_i32_0 = arith.constant 0 : i32
    return %arg0, %c0_i32 : i32, i32
  }
  func.func @transform_1(%arg0: i32) -> (i32, i32) {
    %c0_i32 = arith.constant 0 : i32
    %c0_i32_0 = arith.constant 0 : i32
    %c0_i32_1 = arith.constant 0 : i32
    return %c0_i32, %c0_i32_0 : i32, i32
  }
  func.func @transform_2(%arg0: i32) -> (i32, i32, i32) {
    %c0_i32 = arith.constant 0 : i32
    %c0_i32_0 = arith.constant 0 : i32
    %c0_i32_1 = arith.constant 0 : i32
    %c0_i32_2 = arith.constant 0 : i32
    return %c0_i32, %c0_i32_0, %c0_i32_1 : i32, i32, i32
  }
  func.func @transform_3(%arg0: i32) -> (i32, i32, i32) {
    %c0_i32 = arith.constant 0 : i32
    %c0_i32_0 = arith.constant 0 : i32
    %c0_i32_1 = arith.constant 0 : i32
    %c0_i32_2 = arith.constant 0 : i32
    return %c0_i32, %c0_i32_0, %c0_i32_1 : i32, i32, i32
  }
  func.func @transform_4(%arg0: i32) -> (i32, i32) {
    %c0_i32 = arith.constant 0 : i32
    %c0_i32_0 = arith.constant 0 : i32
    %c0_i32_1 = arith.constant 0 : i32
    return %c0_i32, %c0_i32_0 : i32, i32
  }
  func.func @transform_5(%arg0: i32) -> (i32, i32) {
    %c0_i32 = arith.constant 0 : i32
    %c0_i32_0 = arith.constant 0 : i32
    %c0_i32_1 = arith.constant 0 : i32
    return %c0_i32, %c0_i32_0 : i32, i32
  }
  func.func @transform_6(%arg0: i32) -> (i32, i32) {
    %c0_i32 = arith.constant 0 : i32
    %c0_i32_0 = arith.constant 0 : i32
    return %arg0, %c0_i32 : i32, i32
  }
}

</mosaic_0001>

<bundles_post_ra>
// kernel: tpu_custom_call.1
= control target key start
LH: loop header
LB: loop body
LE: loop exit
PB: predicated region body
PF: predicated region fallthrough
CT: control target
= control target key end

     0   :  { %11 = vsyncpa [#allocation4], 0  ;;  %s2130_s0 = inlined_call_operand.vmem [shape: bf16[128,8], index: 0, kind: input, shape index: {}]   ;;  %s2131_s1 = inlined_call_operand.vmem [shape: bf16[8,128], index: 1, kind: input, shape index: {}]   ;;  %s2132_s2 = inlined_call_operand.vmem [shape: f32[3,1,128], index: 2, kind: input, shape index: {}]   ;;  %s2133_s3 = inlined_call_operand.hbm [shape: bf16[2,128,128], index: 3, kind: input, shape index: {}]   ;;  %s2134_s4 = inlined_call_operand.vmem [shape: bf16[128,128], index: 4, kind: input, shape index: {}]   ;;  %s2135_s5 = inlined_call_operand.vmem [shape: f32[1,128], index: 5, kind: input, shape index: {}]   ;;  %s2136_s6 = inlined_call_operand.hbm [shape: f32[128,128], index: 6, kind: output, shape index: {}]  }
   0x1   :  { %12 = vsyncpa [#allocation5], 0  ;;  %s1946_s21 = smov [#allocation3]  }
   0x2   :  { %s24_s22 = sshll.u32 %s1946_s21, 4  ;;  %s25_s22 = int_to_ptr.vmem [resolvable:$true] %s24_s22 }
   0x3   :  { %s1910_s23 = scalar_lea.vmem %s25_s22, 2048  ;;  %p1915_p1 = scmp.lt.s32.totalorder %s25_s22, %s25_s22 }
   0x4   :  { %p1911_p0 = scmp.ne.s32.totalorder %s25_s22, %s1910_s23  ;;  %p1916_p2 = scmp.lt.s32.totalorder %s1910_s23, %s1910_s23 }
   0x6   :  { %p1917_p3 = por %p1916_p2, %p1915_p1 }
   0x8   :  { %p1918_p4 = pnand %p1917_p3, %p1911_p0 }
   0xa   :  { %1921 = shalt.err (!%p1918_p4)
}
   0xb   :  { %s1947_s24 = smov 64   ;;  %s1948_s25 = smov 4  }
   0xc   :  { %30 = dma.hbm_to_vmem [thread:$0]  %s2133_s3, 2048, %s25_s22, [#allocation4], %s1947_s24, %s1947_s24, %s1948_s25  }
   0xd   :  { %1942 = dma.done.wait [#allocation4], 2048  }
   0xe   :  { %1943 = vsyncadd [#allocation4], 4294965248  ;;  %vm128_vm0 = vcmask 1043456   ;;  %vm103_vm1 = vcmask 64512   ;;  %v55_v0 = vld [vmem:[%s2131_s1] sm:$0xf] }
   0xf   :  { %1839 = vmatprep.subr.msk.bf16.mxu0 %vm128_vm0, %v55_v0  ;;  %v130_v1 = vsel %vm128_vm0, %v55_v0, 0  ;;  %v1846_v2 = vld [vmem:[%s2130_s0] sm:$0xff]   ;;  %v1847_v3 = vld [vmem:[%s2130_s0 + $0x8] sm:$0xff]   ;;  %v1848_v4 = vld [vmem:[%s2130_s0 + $0x10] sm:$0xff]  }
  0x10   :  { %1710 = vmatpush3.bf16.msra.mxu0 %v130_v1  ;;  %1711 = vmatprep.mubr.msk.bf16.mxu0 %vm103_vm1, %v1846_v2  ;;  %v1849_v5 = vld [vmem:[%s2130_s0 + $0x18] sm:$0xff]   ;;  %v1850_v6 = vld [vmem:[%s2130_s0 + $0x20] sm:$0xff]   ;;  %v1855_v8 = vld [vmem:[#allocation3 + $0x30] sm:$0xff]  }
  0x11   :  { %v1854_v7 = vld [vmem:[#allocation3 + $0x38] sm:$0xff]   ;;  %v1851_v9 = vld [vmem:[%s2130_s0 + $0x28] sm:$0xff]   ;;  %v1852_v10 = vld [vmem:[%s2130_s0 + $0x30] sm:$0xff]  }
  0x12   :  { %1727 = vmatprep.subr.bf16.mxu1 %v1854_v7  ;;  %v1853_v11 = vld [vmem:[%s2130_s0 + $0x38] sm:$0xff]   ;;  %v1856_v12 = vld [vmem:[#allocation3 + $0x28] sm:$0xff]   ;;  %v1857_v13 = vld [vmem:[#allocation3 + $0x20] sm:$0xff]  }
  0x13   :  { %1712 = vmatmul.mubr.msk.bf16.vlgmr.msra.gmra.mxu0 %vm103_vm1, %v1847_v3  ;;  %1728 = vmatpush3.bf16.msra.mxu1 %v1854_v7  ;;  %v1858_v14 = vld [vmem:[#allocation3 + $0x18] sm:$0xff]   ;;  %v1859_v15 = vld [vmem:[#allocation3 + $0x10] sm:$0xff]   ;;  %v1860_v16 = vld [vmem:[#allocation3 + $0x8] sm:$0xff]  }
  0x14   :  { %1715 = vmatprep.mubr.msk.bf16.mxu0 %vm103_vm1, %v1848_v4  ;;  %1729 = vmatprep.subr.bf16.mxu1 %v1855_v8  ;;  %v1861_v17 = vld [vmem:[#allocation3] sm:$0xff]   ;;  %v1870_v18 = vld [vmem:[#allocation3 + $0x78] sm:$0xff]   ;;  %v1871_v19 = vld [vmem:[#allocation3 + $0x70] sm:$0xff]  }
  0x15   :  { %1759 = vmatprep.subr.bf16.mxu0 %v1870_v18  ;;  %v2028_v20 = vld [vmem:[%s2132_s2] ss:$0 sm:$0xff] }
  0x16   :  { %1760 = vmatpush3.bf16.msra.mxu0 %v1870_v18 }
  0x17   :  { %1730 = vmatpush3.bf16.msra.mxu1 %v1855_v8  ;;  %1761 = vmatprep.subr.bf16.mxu0 %v1871_v19 }
  0x18   :  { %1731 = vmatprep.subr.bf16.mxu1 %v1856_v12 }
  0x1a   :  { %1762 = vmatpush3.bf16.msra.mxu0 %v1871_v19 }
  0x1b   :  { %1716 = vmatmul.mubr.msk.bf16.gmra.mxu0 %vm103_vm1, %v1849_v5  ;;  %1732 = vmatpush3.bf16.msra.mxu1 %v1856_v12 }
  0x1c   :  { %1719 = vmatprep.mubr.msk.bf16.mxu0 %vm103_vm1, %v1850_v6  ;;  %1733 = vmatprep.subr.bf16.mxu1 %v1857_v13 }
  0x1f   :  { %1734 = vmatpush3.bf16.msra.mxu1 %v1857_v13 }
  0x20   :  { %1735 = vmatprep.subr.bf16.mxu1 %v1858_v14 }
  0x23   :  { %1720 = vmatmul.mubr.msk.bf16.gmra.mxu0 %vm103_vm1, %v1851_v9  ;;  %1736 = vmatpush3.bf16.msra.mxu1 %v1858_v14 }
  0x24   :  { %1723 = vmatprep.mubr.msk.bf16.mxu0 %vm103_vm1, %v1852_v10  ;;  %1737 = vmatprep.subr.bf16.mxu1 %v1859_v15 }
  0x27   :  { %1738 = vmatpush3.bf16.msra.mxu1 %v1859_v15 }
  0x28   :  { %1739 = vmatprep.subr.bf16.mxu1 %v1860_v16 }
  0x2b   :  { %1724 = vmatmul.mubr.msk.bf16.gmra.mxu0 %vm103_vm1, %v1853_v11  ;;  %1740 = vmatpush3.bf16.msra.mxu1 %v1860_v16 }
  0x2c   :  { %1741 = vmatprep.subr.bf16.mxu1 %v1861_v17 }
  0x2f   :  { %1742 = vmatpush3.bf16.msra.mxu1 %v1861_v17 }
  0xd3   :  { %v1713_v21 = vpop.f32.mrf.mxu0 }
  0xd4   :  { %v175_v22 = vadd.f32 %v1713_v21, %v2028_v20 }
  0xd5   :  { %v166_v23 = vpop.f32.mrf.mxu0 }
  0xd6   :  { %v167_v24 = vadd.f32 %v2028_v20, %v166_v23  ;;  %v247_v25 = vmul.f32 0.01, %v175_v22  ;;  %vm231_vm2 = vcmp.ge.f32.partialorder %v175_v22, 0.0 }
  0xd7   :  { %v1714_v26 = vpop.f32.mrf.mxu0 }
  0xd8   :  { %v178_v27 = vadd.f32 %v1714_v26, %v2028_v20  ;;  %v245_v29 = vmul.f32 0.01, %v167_v24  ;;  %v263_v32 = vsel %vm231_vm2, %v175_v22, %v247_v25  ;;  %vm229_vm4 = vcmp.ge.f32.partialorder %v167_v24, 0.0 }
  0xd9   :  { %v169_v28 = vpop.f32.mrf.mxu0 }
  0xda   :  { %vm232_vm3 = vcmp.ge.f32.partialorder %v178_v27, 0.0  ;;  %v248_v30 = vmul.f32 0.01, %v178_v27  ;;  %v170_v31 = vadd.f32 %v2028_v20, %v169_v28  ;;  %v261_v39 = vsel %vm229_vm4, %v167_v24, %v245_v29 }
  0xdb   :  { %v1717_v33 = vpop.f32.mrf.mxu0 }
  0xdc   :  { %v264_v34 = vsel %vm232_vm3, %v178_v27, %v248_v30  ;;  %vm230_vm5 = vcmp.ge.f32.partialorder %v170_v31, 0.0  ;;  %v246_v35 = vmul.f32 0.01, %v170_v31  ;;  %v191_v36 = vadd.f32 %v1717_v33, %v2028_v20 }
  0xdd   :  { %v1519_v37 = vpack.c.bf16 %v264_v34, %v263_v32  ;;  %v182_v38 = vpop.f32.mrf.mxu0 }
  0xde   :  { %v262_v40 = vsel %vm230_vm5, %v170_v31, %v246_v35  ;;  %v183_v41 = vadd.f32 %v2028_v20, %v182_v38  ;;  %v251_v43 = vmul.f32 0.01, %v191_v36  ;;  %vm235_vm6 = vcmp.ge.f32.partialorder %v191_v36, 0.0  ;;  %v1873_v38 = vld [vmem:[#allocation3 + $0x60] sm:$0xff]  }
  0xdf   :  { %1631 = vst [vmem:[#allocation2 + $0x8] sm:$0xff] %v1519_v37   ;;  %v1514_v42 = vpack.c.bf16 %v262_v40, %v261_v39  ;;  %v1718_v44 = vpop.f32.mrf.mxu0  ;;  %v1874_v39 = vld [vmem:[#allocation3 + $0x58] sm:$0xff]   ;;  %v1875_v40 = vld [vmem:[#allocation3 + $0x50] sm:$0xff]  }
  0xe0   :  { %v194_v45 = vadd.f32 %v1718_v44, %v2028_v20  ;;  %v249_v47 = vmul.f32 0.01, %v183_v41  ;;  %v267_v50 = vsel %vm235_vm6, %v191_v36, %v251_v43  ;;  %vm233_vm8 = vcmp.ge.f32.partialorder %v183_v41, 0.0  ;;  %v2049_v43 = vld [vmem:[%s2134_s4 + $0x38] sm:$0xff]   ;;  %v2055_v44 = vld [vmem:[%s2134_s4 + $0x30] sm:$0xff]  }
  0xe1   :  { %1515 = vst [vmem:[#allocation2] sm:$0xff] %v1514_v42   ;;  %v185_v46 = vpop.f32.mrf.mxu0  ;;  %v1877_v42 = vld [vmem:[#allocation3 + $0x40] sm:$0xff]   ;;  %1823 = vmatprep.subr.bf16.mxu1 %v2049_v43 }
  0xe2   :  { %vm236_vm7 = vcmp.ge.f32.partialorder %v194_v45, 0.0  ;;  %v252_v48 = vmul.f32 0.01, %v194_v45  ;;  %v186_v49 = vadd.f32 %v2028_v20, %v185_v46  ;;  %v265_v57 = vsel %vm233_vm8, %v183_v41, %v249_v47  ;;  %v1876_v41 = vld [vmem:[#allocation3 + $0x48] sm:$0xff]  }
  0xe3   :  { %v1721_v51 = vpop.f32.mrf.mxu0 }
  0xe4   :  { %v268_v52 = vsel %vm236_vm7, %v194_v45, %v252_v48  ;;  %vm234_vm9 = vcmp.ge.f32.partialorder %v186_v49, 0.0  ;;  %v250_v53 = vmul.f32 0.01, %v186_v49  ;;  %v207_v54 = vadd.f32 %v1721_v51, %v2028_v20  ;;  %v2064_v45 = vld [vmem:[%s2132_s2 + $0x1] ss:$0 sm:$0xff] }
  0xe5   :  { %v1529_v55 = vpack.c.bf16 %v268_v52, %v267_v50  ;;  %v198_v56 = vpop.f32.mrf.mxu0 }
  0xe6   :  { %v266_v58 = vsel %vm234_vm9, %v186_v49, %v250_v53  ;;  %v199_v59 = vadd.f32 %v2028_v20, %v198_v56  ;;  %v255_v61 = vmul.f32 0.01, %v207_v54  ;;  %vm239_vm10 = vcmp.ge.f32.partialorder %v207_v54, 0.0  ;;  %v1863_v2 = vld [vmem:[#allocation2 + $0x8] sm:$0xff]  }
  0xe7   :  { %1633 = vst [vmem:[#allocation2 + $0x18] sm:$0xff] %v1529_v55   ;;  %v1524_v60 = vpack.c.bf16 %v266_v58, %v265_v57  ;;  %v1722_v62 = vpop.f32.mrf.mxu0 }
  0xe8   :  { %v210_v63 = vadd.f32 %v1722_v62, %v2028_v20  ;;  %v1862_v0 = vld [vmem:[#allocation2] sm:$0xff]   ;;  %v253_v3 = vmul.f32 0.01, %v199_v59  ;;  %v271_v6 = vsel %vm239_vm10, %v207_v54, %v255_v61  ;;  %vm237_vm12 = vcmp.ge.f32.partialorder %v199_v59, 0.0 }
  0xe9   :  { %1632 = vst [vmem:[#allocation2 + $0x10] sm:$0xff] %v1524_v60   ;;  %v201_v1 = vpop.f32.mrf.mxu0  ;;  %1743 = vmatprep.mubr.bf16.mxu1 %v1862_v0 }
  0xea   :  { %vm240_vm11 = vcmp.ge.f32.partialorder %v210_v63, 0.0  ;;  %v256_v4 = vmul.f32 0.01, %v210_v63  ;;  %v202_v5 = vadd.f32 %v2028_v20, %v201_v1  ;;  %1744 = vmatmul.mubr.bf16.vlgmr.msra.gmra.mxu1 %v1863_v2  ;;  %v269_v13 = vsel %vm237_vm12, %v199_v59, %v253_v3 }
  0xeb   :  { %v1725_v7 = vpop.f32.mrf.mxu0  ;;  %1831 = vmatpush3.bf16.msra.mxu1 %v2049_v43 }
  0xec   :  { %v272_v8 = vsel %vm240_vm11, %v210_v63, %v256_v4  ;;  %vm238_vm13 = vcmp.ge.f32.partialorder %v202_v5, 0.0  ;;  %v254_v9 = vmul.f32 0.01, %v202_v5  ;;  %v223_v10 = vadd.f32 %v1725_v7, %v2028_v20  ;;  %1824 = vmatprep.subr.bf16.mxu1 %v2055_v44 }
  0xed   :  { %v1539_v11 = vpack.c.bf16 %v272_v8, %v271_v6  ;;  %v214_v12 = vpop.f32.mrf.mxu0 }
  0xee   :  { %v270_v14 = vsel %vm238_vm13, %v202_v5, %v254_v9  ;;  %v215_v15 = vadd.f32 %v2028_v20, %v214_v12  ;;  %v259_v18 = vmul.f32 0.01, %v223_v10  ;;  %vm243_vm14 = vcmp.ge.f32.partialorder %v223_v10, 0.0  ;;  %v1865_v23 = vld [vmem:[#allocation2 + $0x18] sm:$0xff]  }
  0xef   :  { %1635 = vst [vmem:[#allocation2 + $0x28] sm:$0xff] %v1539_v11   ;;  %v1534_v16 = vpack.c.bf16 %v270_v14, %v269_v13  ;;  %v1726_v17 = vpop.f32.mrf.mxu0  ;;  %1832 = vmatpush3.bf16.msra.mxu1 %v2055_v44 }
  0xf0   :  { %v226_v19 = vadd.f32 %v1726_v17, %v2028_v20  ;;  %v1864_v21 = vld [vmem:[#allocation2 + $0x10] sm:$0xff]   ;;  %v257_v24 = vmul.f32 0.01, %v215_v15  ;;  %vm241_vm0 = vcmp.ge.f32.partialorder %v215_v15, 0.0  ;;  %v275_v27 = vsel %vm243_vm14, %v223_v10, %v259_v18 }
  0xf1   :  { %1634 = vst [vmem:[#allocation2 + $0x20] sm:$0xff] %v1534_v16   ;;  %v217_v22 = vpop.f32.mrf.mxu0  ;;  %1747 = vmatprep.mubr.bf16.mxu1 %v1864_v21 }
  0xf2   :  { %vm244_vm15 = vcmp.ge.f32.partialorder %v226_v19, 0.0  ;;  %v260_v25 = vmul.f32 0.01, %v226_v19  ;;  %v218_v26 = vadd.f32 %v2028_v20, %v217_v22  ;;  %1748 = vmatmul.mubr.bf16.gmra.mxu1 %v1865_v23  ;;  %v273_v31 = vsel %vm241_vm0, %v215_v15, %v257_v24  ;;  %v1872_v20 = vld [vmem:[#allocation3 + $0x68] sm:$0xff]  }
  0xf3   :  { %1763 = vmatprep.subr.bf16.mxu0 %v1872_v20 }
  0xf4   :  { %v276_v28 = vsel %vm244_vm15, %v226_v19, %v260_v25  ;;  %vm242_vm1 = vcmp.ge.f32.partialorder %v218_v26, 0.0  ;;  %v258_v29 = vmul.f32 0.01, %v218_v26  ;;  %1764 = vmatpush3.bf16.msra.mxu0 %v1872_v20 }
  0xf5   :  { %v1549_v30 = vpack.c.bf16 %v276_v28, %v275_v27  ;;  %1765 = vmatprep.subr.bf16.mxu0 %v1873_v38 }
  0xf6   :  { %v274_v32 = vsel %vm242_vm1, %v218_v26, %v258_v29  ;;  %v1867_v35 = vld [vmem:[#allocation2 + $0x28] sm:$0xff]  }
  0xf7   :  { %1637 = vst [vmem:[#allocation2 + $0x38] sm:$0xff] %v1549_v30   ;;  %v1544_v33 = vpack.c.bf16 %v274_v32, %v273_v31 }
  0xf8   :  { %v1866_v34 = vld [vmem:[#allocation2 + $0x20] sm:$0xff]   ;;  %1766 = vmatpush3.bf16.msra.mxu0 %v1873_v38 }
  0xf9   :  { %1636 = vst [vmem:[#allocation2 + $0x30] sm:$0xff] %v1544_v33   ;;  %1751 = vmatprep.mubr.bf16.mxu1 %v1866_v34  ;;  %1767 = vmatprep.subr.bf16.mxu0 %v1874_v39 }
  0xfa   :  { %1752 = vmatmul.mubr.bf16.gmra.mxu1 %v1867_v35 }
  0xfc   :  { %1768 = vmatpush3.bf16.msra.mxu0 %v1874_v39 }
  0xfd   :  { %1769 = vmatprep.subr.bf16.mxu0 %v1875_v40 }
  0xfe   :  { %v1869_v37 = vld [vmem:[#allocation2 + $0x38] sm:$0xff]  }
 0x100   :  { %v1868_v36 = vld [vmem:[#allocation2 + $0x30] sm:$0xff]   ;;  %1770 = vmatpush3.bf16.msra.mxu0 %v1875_v40 }
 0x101   :  { %1755 = vmatprep.mubr.bf16.mxu1 %v1868_v36  ;;  %1771 = vmatprep.subr.bf16.mxu0 %v1876_v41 }
 0x102   :  { %1756 = vmatmul.mubr.bf16.gmra.mxu1 %v1869_v37 }
 0x104   :  { %1772 = vmatpush3.bf16.msra.mxu0 %v1876_v41 }
 0x105   :  { %1773 = vmatprep.subr.bf16.mxu0 %v1877_v42 }
 0x108   :  { %1774 = vmatpush3.bf16.msra.mxu0 %v1877_v42 }
 0x109   :  { %1791 = vmatprep.subr.bf16.mxu0 %v2049_v43 }
 0x1aa   :  { %v1745_v46 = vpop.f32.mrf.mxu1 }
 0x1ab   :  { %v536_v47 = vadd.f32 %v1745_v46, %v2064_v45 }
 0x1ac   :  { %v527_v48 = vpop.f32.mrf.mxu1 }
 0x1ad   :  { %v528_v49 = vadd.f32 %v2064_v45, %v527_v48  ;;  %v608_v50 = vmul.f32 0.01, %v536_v47  ;;  %vm592_vm2 = vcmp.ge.f32.partialorder %v536_v47, 0.0 }
 0x1ae   :  { %v1746_v51 = vpop.f32.mrf.mxu1 }
 0x1af   :  { %v539_v52 = vadd.f32 %v1746_v51, %v2064_v45  ;;  %v606_v54 = vmul.f32 0.01, %v528_v49  ;;  %v624_v57 = vsel %vm592_vm2, %v536_v47, %v608_v50  ;;  %vm590_vm4 = vcmp.ge.f32.partialorder %v528_v49, 0.0 }
 0x1b0   :  { %v530_v53 = vpop.f32.mrf.mxu1 }
 0x1b1   :  { %vm593_vm3 = vcmp.ge.f32.partialorder %v539_v52, 0.0  ;;  %v609_v55 = vmul.f32 0.01, %v539_v52  ;;  %v531_v56 = vadd.f32 %v2064_v45, %v530_v53  ;;  %v622_v0 = vsel %vm590_vm4, %v528_v49, %v606_v54 }
 0x1b2   :  { %v1749_v58 = vpop.f32.mrf.mxu1 }
 0x1b3   :  { %v625_v59 = vsel %vm593_vm3, %v539_v52, %v609_v55  ;;  %vm591_vm5 = vcmp.ge.f32.partialorder %v531_v56, 0.0  ;;  %v607_v60 = vmul.f32 0.01, %v531_v56  ;;  %v552_v61 = vadd.f32 %v1749_v58, %v2064_v45 }
 0x1b4   :  { %v1559_v62 = vpack.c.bf16 %v625_v59, %v624_v57  ;;  %v543_v63 = vpop.f32.mrf.mxu1 }
 0x1b5   :  { %v623_v1 = vsel %vm591_vm5, %v531_v56, %v607_v60  ;;  %v544_v2 = vadd.f32 %v2064_v45, %v543_v63  ;;  %v612_v4 = vmul.f32 0.01, %v552_v61  ;;  %vm596_vm6 = vcmp.ge.f32.partialorder %v552_v61, 0.0  ;;  %v1889_v63 = vld [vmem:[%s2134_s4 + $0x20] sm:$0xff]  }
 0x1b6   :  { %1638 = vst [vmem:[#allocation2 + $0x8] sm:$0xff] %v1559_v62   ;;  %v1554_v3 = vpack.c.bf16 %v623_v1, %v622_v0  ;;  %v1750_v5 = vpop.f32.mrf.mxu1  ;;  %v1890_v0 = vld [vmem:[%s2134_s4 + $0x18] sm:$0xff]   ;;  %v1891_v1 = vld [vmem:[%s2134_s4 + $0x10] sm:$0xff]  }
 0x1b7   :  { %v555_v6 = vadd.f32 %v1750_v5, %v2064_v45  ;;  %v610_v8 = vmul.f32 0.01, %v544_v2  ;;  %v628_v11 = vsel %vm596_vm6, %v552_v61, %v612_v4  ;;  %vm594_vm8 = vcmp.ge.f32.partialorder %v544_v2, 0.0  ;;  %v2106_v4 = vld [vmem:[%s2132_s2 + $0x2] ss:$0 sm:$0xff] }
 0x1b8   :  { %1555 = vst [vmem:[#allocation2] sm:$0xff] %v1554_v3   ;;  %v546_v7 = vpop.f32.mrf.mxu1  ;;  %v1893_v3 = vld [vmem:[%s2134_s4] sm:$0xff]  }
 0x1b9   :  { %vm597_vm7 = vcmp.ge.f32.partialorder %v555_v6, 0.0  ;;  %v613_v9 = vmul.f32 0.01, %v555_v6  ;;  %v547_v10 = vadd.f32 %v2064_v45, %v546_v7  ;;  %v626_v18 = vsel %vm594_vm8, %v544_v2, %v610_v8  ;;  %v1892_v2 = vld [vmem:[%s2134_s4 + $0x8] sm:$0xff]  }
 0x1ba   :  { %v1753_v12 = vpop.f32.mrf.mxu1 }
 0x1bb   :  { %v629_v13 = vsel %vm597_vm7, %v555_v6, %v613_v9  ;;  %vm595_vm9 = vcmp.ge.f32.partialorder %v547_v10, 0.0  ;;  %v611_v14 = vmul.f32 0.01, %v547_v10  ;;  %v568_v15 = vadd.f32 %v1753_v12, %v2064_v45 }
 0x1bc   :  { %v1569_v16 = vpack.c.bf16 %v629_v13, %v628_v11  ;;  %v559_v17 = vpop.f32.mrf.mxu1 }
 0x1bd   :  { %v627_v19 = vsel %vm595_vm9, %v547_v10, %v611_v14  ;;  %v560_v21 = vadd.f32 %v2064_v45, %v559_v17  ;;  %v616_v23 = vmul.f32 0.01, %v568_v15  ;;  %vm600_vm10 = vcmp.ge.f32.partialorder %v568_v15, 0.0  ;;  %v1879_v28 = vld [vmem:[#allocation2 + $0x8] sm:$0xff]  }
 0x1be   :  { %1640 = vst [vmem:[#allocation2 + $0x18] sm:$0xff] %v1569_v16   ;;  %v1564_v22 = vpack.c.bf16 %v627_v19, %v626_v18  ;;  %v1754_v24 = vpop.f32.mrf.mxu1 }
 0x1bf   :  { %v571_v25 = vadd.f32 %v1754_v24, %v2064_v45  ;;  %v1878_v26 = vld [vmem:[#allocation2] sm:$0xff]   ;;  %v614_v29 = vmul.f32 0.01, %v560_v21  ;;  %v632_v32 = vsel %vm600_vm10, %v568_v15, %v616_v23  ;;  %vm598_vm12 = vcmp.ge.f32.partialorder %v560_v21, 0.0 }
 0x1c0   :  { %1639 = vst [vmem:[#allocation2 + $0x10] sm:$0xff] %v1564_v22   ;;  %v562_v27 = vpop.f32.mrf.mxu1  ;;  %1775 = vmatprep.mubr.bf16.mxu0 %v1878_v26 }
 0x1c1   :  { %vm601_vm11 = vcmp.ge.f32.partialorder %v571_v25, 0.0  ;;  %v617_v30 = vmul.f32 0.01, %v571_v25  ;;  %v563_v31 = vadd.f32 %v2064_v45, %v562_v27  ;;  %1776 = vmatmul.mubr.bf16.vlgmr.msra.gmra.mxu0 %v1879_v28  ;;  %v630_v38 = vsel %vm598_vm12, %v560_v21, %v614_v29 }
 0x1c2   :  { %v1757_v33 = vpop.f32.mrf.mxu1  ;;  %1792 = vmatpush3.bf16.msra.mxu0 %v2049_v43 }
 0x1c3   :  { %v633_v34 = vsel %vm601_vm11, %v571_v25, %v617_v30  ;;  %vm599_vm13 = vcmp.ge.f32.partialorder %v563_v31, 0.0  ;;  %v615_v35 = vmul.f32 0.01, %v563_v31  ;;  %v584_v36 = vadd.f32 %v1757_v33, %v2064_v45  ;;  %1793 = vmatprep.subr.bf16.mxu0 %v2055_v44 }
 0x1c4   :  { %v1579_v37 = vpack.c.bf16 %v633_v34, %v632_v32  ;;  %v575_v20 = vpop.f32.mrf.mxu1 }
 0x1c5   :  { %v631_v39 = vsel %vm599_vm13, %v563_v31, %v615_v35  ;;  %v576_v40 = vadd.f32 %v2064_v45, %v575_v20  ;;  %v620_v46 = vmul.f32 0.01, %v584_v36  ;;  %vm604_vm14 = vcmp.ge.f32.partialorder %v584_v36, 0.0  ;;  %v1881_v49 = vld [vmem:[#allocation2 + $0x18] sm:$0xff]  }
 0x1c6   :  { %1642 = vst [vmem:[#allocation2 + $0x28] sm:$0xff] %v1579_v37   ;;  %v1574_v41 = vpack.c.bf16 %v631_v39, %v630_v38  ;;  %v1758_v42 = vpop.f32.mrf.mxu1  ;;  %1794 = vmatpush3.bf16.msra.mxu0 %v2055_v44 }
 0x1c7   :  { %v587_v47 = vadd.f32 %v1758_v42, %v2064_v45  ;;  %v1880_v48 = vld [vmem:[#allocation2 + $0x10] sm:$0xff]   ;;  %v618_v50 = vmul.f32 0.01, %v576_v40  ;;  %vm602_vm0 = vcmp.ge.f32.partialorder %v576_v40, 0.0  ;;  %v636_v53 = vsel %vm604_vm14, %v584_v36, %v620_v46 }
 0x1c8   :  { %1641 = vst [vmem:[#allocation2 + $0x20] sm:$0xff] %v1574_v41   ;;  %v578_v43 = vpop.f32.mrf.mxu1  ;;  %1779 = vmatprep.mubr.bf16.mxu0 %v1880_v48 }
 0x1c9   :  { %vm605_vm15 = vcmp.ge.f32.partialorder %v587_v47, 0.0  ;;  %v621_v51 = vmul.f32 0.01, %v587_v47  ;;  %v579_v52 = vadd.f32 %v2064_v45, %v578_v43  ;;  %1780 = vmatmul.mubr.bf16.gmra.mxu0 %v1881_v49  ;;  %v634_v57 = vsel %vm602_vm0, %v576_v40, %v618_v50  ;;  %v1888_v45 = vld [vmem:[%s2134_s4 + $0x28] sm:$0xff]  }
 0x1ca   :  { %1795 = vmatprep.subr.bf16.mxu0 %v1888_v45  ;;  %1825 = vmatprep.subr.bf16.mxu1 %v1888_v45 }
 0x1cb   :  { %v637_v54 = vsel %vm605_vm15, %v587_v47, %v621_v51  ;;  %vm603_vm1 = vcmp.ge.f32.partialorder %v579_v52, 0.0  ;;  %v619_v55 = vmul.f32 0.01, %v579_v52  ;;  %1796 = vmatpush3.bf16.msra.mxu0 %v1888_v45  ;;  %1833 = vmatpush3.bf16.msra.mxu1 %v1888_v45 }
 0x1cc   :  { %v1589_v56 = vpack.c.bf16 %v637_v54, %v636_v53  ;;  %1797 = vmatprep.subr.bf16.mxu0 %v1889_v63  ;;  %1826 = vmatprep.subr.bf16.mxu1 %v1889_v63 }
 0x1cd   :  { %v635_v58 = vsel %vm603_vm1, %v579_v52, %v619_v55  ;;  %v1883_v60 = vld [vmem:[#allocation2 + $0x28] sm:$0xff]  }
 0x1ce   :  { %1644 = vst [vmem:[#allocation2 + $0x38] sm:$0xff] %v1589_v56   ;;  %v1584_v44 = vpack.c.bf16 %v635_v58, %v634_v57 }
 0x1cf   :  { %v1882_v59 = vld [vmem:[#allocation2 + $0x20] sm:$0xff]   ;;  %1798 = vmatpush3.bf16.msra.mxu0 %v1889_v63  ;;  %1834 = vmatpush3.bf16.msra.mxu1 %v1889_v63 }
 0x1d0   :  { %1643 = vst [vmem:[#allocation2 + $0x30] sm:$0xff] %v1584_v44   ;;  %1783 = vmatprep.mubr.bf16.mxu0 %v1882_v59  ;;  %1799 = vmatprep.subr.bf16.mxu0 %v1890_v0 }
 0x1d1   :  { %1784 = vmatmul.mubr.bf16.gmra.mxu0 %v1883_v60  ;;  %1827 = vmatprep.subr.bf16.mxu1 %v1890_v0 }
 0x1d3   :  { %1800 = vmatpush3.bf16.msra.mxu0 %v1890_v0  ;;  %1835 = vmatpush3.bf16.msra.mxu1 %v1890_v0 }
 0x1d4   :  { %1801 = vmatprep.subr.bf16.mxu0 %v1891_v1  ;;  %1828 = vmatprep.subr.bf16.mxu1 %v1891_v1 }
 0x1d5   :  { %v1885_v62 = vld [vmem:[#allocation2 + $0x38] sm:$0xff]  }
 0x1d7   :  { %v1884_v61 = vld [vmem:[#allocation2 + $0x30] sm:$0xff]   ;;  %1802 = vmatpush3.bf16.msra.mxu0 %v1891_v1  ;;  %1836 = vmatpush3.bf16.msra.mxu1 %v1891_v1 }
 0x1d8   :  { %1787 = vmatprep.mubr.bf16.mxu0 %v1884_v61  ;;  %1803 = vmatprep.subr.bf16.mxu0 %v1892_v2 }
 0x1d9   :  { %1788 = vmatmul.mubr.bf16.gmra.mxu0 %v1885_v62  ;;  %1829 = vmatprep.subr.bf16.mxu1 %v1892_v2 }
 0x1db   :  { %1804 = vmatpush3.bf16.msra.mxu0 %v1892_v2  ;;  %1837 = vmatpush3.bf16.msra.mxu1 %v1892_v2 }
 0x1dc   :  { %1805 = vmatprep.subr.bf16.mxu0 %v1893_v3  ;;  %1830 = vmatprep.subr.bf16.mxu1 %v1893_v3 }
 0x1df   :  { %1806 = vmatpush3.bf16.msra.mxu0 %v1893_v3  ;;  %1838 = vmatpush3.bf16.msra.mxu1 %v1893_v3 }
 0x281   :  { %v1777_v5 = vpop.f32.mrf.mxu0 }
 0x282   :  { %v898_v6 = vadd.f32 %v1777_v5, %v2106_v4 }
 0x283   :  { %v889_v7 = vpop.f32.mrf.mxu0 }
 0x284   :  { %v890_v8 = vadd.f32 %v2106_v4, %v889_v7  ;;  %v970_v9 = vmul.f32 0.01, %v898_v6  ;;  %vm954_vm2 = vcmp.ge.f32.partialorder %v898_v6, 0.0 }
 0x285   :  { %v1778_v10 = vpop.f32.mrf.mxu0 }
 0x286   :  { %v901_v11 = vadd.f32 %v1778_v10, %v2106_v4  ;;  %v968_v13 = vmul.f32 0.01, %v890_v8  ;;  %v986_v16 = vsel %vm954_vm2, %v898_v6, %v970_v9  ;;  %vm952_vm4 = vcmp.ge.f32.partialorder %v890_v8, 0.0 }
 0x287   :  { %v892_v12 = vpop.f32.mrf.mxu0 }
 0x288   :  { %vm955_vm3 = vcmp.ge.f32.partialorder %v901_v11, 0.0  ;;  %v971_v14 = vmul.f32 0.01, %v901_v11  ;;  %v893_v15 = vadd.f32 %v2106_v4, %v892_v12  ;;  %v984_v24 = vsel %vm952_vm4, %v890_v8, %v968_v13 }
 0x289   :  { %v1781_v17 = vpop.f32.mrf.mxu0 }
 0x28a   :  { %v987_v18 = vsel %vm955_vm3, %v901_v11, %v971_v14  ;;  %vm953_vm5 = vcmp.ge.f32.partialorder %v893_v15, 0.0  ;;  %v969_v19 = vmul.f32 0.01, %v893_v15  ;;  %v914_v21 = vadd.f32 %v1781_v17, %v2106_v4 }
 0x28b   :  { %v1599_v22 = vpack.c.bf16 %v987_v18, %v986_v16  ;;  %v905_v23 = vpop.f32.mrf.mxu0 }
 0x28c   :  { %v985_v25 = vsel %vm953_vm5, %v893_v15, %v969_v19  ;;  %v906_v26 = vadd.f32 %v2106_v4, %v905_v23  ;;  %v974_v28 = vmul.f32 0.01, %v914_v21  ;;  %vm958_vm6 = vcmp.ge.f32.partialorder %v914_v21, 0.0 }
 0x28d   :  { %1645 = vst [vmem:[#allocation2 + $0x8] sm:$0xff] %v1599_v22   ;;  %v1594_v27 = vpack.c.bf16 %v985_v25, %v984_v24  ;;  %v1782_v29 = vpop.f32.mrf.mxu0 }
 0x28e   :  { %v917_v30 = vadd.f32 %v1782_v29, %v2106_v4  ;;  %v972_v32 = vmul.f32 0.01, %v906_v26  ;;  %v990_v35 = vsel %vm958_vm6, %v914_v21, %v974_v28  ;;  %vm956_vm8 = vcmp.ge.f32.partialorder %v906_v26, 0.0 }
 0x28f   :  { %1595 = vst [vmem:[#allocation2] sm:$0xff] %v1594_v27   ;;  %v908_v31 = vpop.f32.mrf.mxu0 }
 0x290   :  { %vm959_vm7 = vcmp.ge.f32.partialorder %v917_v30, 0.0  ;;  %v975_v33 = vmul.f32 0.01, %v917_v30  ;;  %v909_v34 = vadd.f32 %v2106_v4, %v908_v31  ;;  %v988_v41 = vsel %vm956_vm8, %v906_v26, %v972_v32 }
 0x291   :  { %v1785_v36 = vpop.f32.mrf.mxu0 }
 0x292   :  { %v991_v37 = vsel %vm959_vm7, %v917_v30, %v975_v33  ;;  %vm957_vm9 = vcmp.ge.f32.partialorder %v909_v34, 0.0  ;;  %v973_v20 = vmul.f32 0.01, %v909_v34  ;;  %v930_v38 = vadd.f32 %v1785_v36, %v2106_v4 }
 0x293   :  { %v1609_v39 = vpack.c.bf16 %v991_v37, %v990_v35  ;;  %v921_v40 = vpop.f32.mrf.mxu0 }
 0x294   :  { %v989_v42 = vsel %vm957_vm9, %v909_v34, %v973_v20  ;;  %v922_v46 = vadd.f32 %v2106_v4, %v921_v40  ;;  %v978_v48 = vmul.f32 0.01, %v930_v38  ;;  %vm962_vm10 = vcmp.ge.f32.partialorder %v930_v38, 0.0  ;;  %v1895_v52 = vld [vmem:[#allocation2 + $0x8] sm:$0xff]  }
 0x295   :  { %1647 = vst [vmem:[#allocation2 + $0x18] sm:$0xff] %v1609_v39   ;;  %v1604_v47 = vpack.c.bf16 %v989_v42, %v988_v41  ;;  %v1786_v43 = vpop.f32.mrf.mxu0 }
 0x296   :  { %v933_v49 = vadd.f32 %v1786_v43, %v2106_v4  ;;  %v1894_v50 = vld [vmem:[#allocation2] sm:$0xff]   ;;  %v976_v53 = vmul.f32 0.01, %v922_v46  ;;  %v994_v56 = vsel %vm962_vm10, %v930_v38, %v978_v48  ;;  %vm960_vm12 = vcmp.ge.f32.partialorder %v922_v46, 0.0 }
 0x297   :  { %1646 = vst [vmem:[#allocation2 + $0x10] sm:$0xff] %v1604_v47   ;;  %v924_v51 = vpop.f32.mrf.mxu0  ;;  %1807 = vmatprep.mubr.bf16.mxu0 %v1894_v50 }
 0x298   :  { %vm963_vm11 = vcmp.ge.f32.partialorder %v933_v49, 0.0  ;;  %v979_v54 = vmul.f32 0.01, %v933_v49  ;;  %v925_v55 = vadd.f32 %v2106_v4, %v924_v51  ;;  %1808 = vmatmul.mubr.bf16.vlgmr.msra.gmra.mxu0 %v1895_v52  ;;  %v992_v62 = vsel %vm960_vm12, %v922_v46, %v976_v53 }
 0x299   :  { %v1789_v57 = vpop.f32.mrf.mxu0 }
 0x29a   :  { %v995_v58 = vsel %vm963_vm11, %v933_v49, %v979_v54  ;;  %vm961_vm13 = vcmp.ge.f32.partialorder %v925_v55, 0.0  ;;  %v977_v44 = vmul.f32 0.01, %v925_v55  ;;  %v946_v59 = vadd.f32 %v1789_v57, %v2106_v4 }
 0x29b   :  { %v1619_v60 = vpack.c.bf16 %v995_v58, %v994_v56  ;;  %v937_v61 = vpop.f32.mrf.mxu0 }
 0x29c   :  { %v993_v45 = vsel %vm961_vm13, %v925_v55, %v977_v44  ;;  %v938_v63 = vadd.f32 %v2106_v4, %v937_v61  ;;  %v982_v2 = vmul.f32 0.01, %v946_v59  ;;  %vm966_vm14 = vcmp.ge.f32.partialorder %v946_v59, 0.0  ;;  %v1897_v7 = vld [vmem:[#allocation2 + $0x18] sm:$0xff]  }
 0x29d   :  { %1649 = vst [vmem:[#allocation2 + $0x28] sm:$0xff] %v1619_v60   ;;  %v1614_v0 = vpack.c.bf16 %v993_v45, %v992_v62  ;;  %v1790_v1 = vpop.f32.mrf.mxu0 }
 0x29e   :  { %v949_v3 = vadd.f32 %v1790_v1, %v2106_v4  ;;  %v1896_v5 = vld [vmem:[#allocation2 + $0x10] sm:$0xff]   ;;  %v980_v8 = vmul.f32 0.01, %v938_v63  ;;  %vm964_vm0 = vcmp.ge.f32.partialorder %v938_v63, 0.0  ;;  %v998_v11 = vsel %vm966_vm14, %v946_v59, %v982_v2 }
 0x29f   :  { %1648 = vst [vmem:[#allocation2 + $0x20] sm:$0xff] %v1614_v0   ;;  %v940_v6 = vpop.f32.mrf.mxu0  ;;  %1811 = vmatprep.mubr.bf16.mxu1 %v1896_v5 }
 0x2a0   :  { %vm967_vm15 = vcmp.ge.f32.partialorder %v949_v3, 0.0  ;;  %v983_v9 = vmul.f32 0.01, %v949_v3  ;;  %v941_v10 = vadd.f32 %v2106_v4, %v940_v6  ;;  %1812 = vmatmul.mubr.bf16.vlgmr.msra.gmra.mxu1 %v1897_v7  ;;  %v996_v15 = vsel %vm964_vm0, %v938_v63, %v980_v8  ;;  %v1446_v4 = vld [vmem:[%s2135_s5] ss:$0 sm:$0xff]  ;;  %s1949_s5 = smov [#allocation6]  }
 0x2a1   :  { %s1333_s15 = sshll.u32 %s1949_s5, 4  ;;  %s1334_s15 = int_to_ptr.vmem [resolvable:$true] %s1333_s15 }
 0x2a2   :  { %v999_v12 = vsel %vm967_vm15, %v949_v3, %v983_v9  ;;  %vm965_vm1 = vcmp.ge.f32.partialorder %v941_v10, 0.0  ;;  %v981_v13 = vmul.f32 0.01, %v941_v10  ;;  %s1922_s16 = scalar_lea.vmem %s1334_s15, 2048  ;;  %p1927_p6 = scmp.lt.s32.totalorder %s1334_s15, %s1334_s15 }
 0x2a3   :  { %v1629_v14 = vpack.c.bf16 %v999_v12, %v998_v11  ;;  %p1923_p5 = scmp.ne.s32.totalorder %s1334_s15, %s1922_s16  ;;  %p1928_p7 = scmp.lt.s32.totalorder %s1922_s16, %s1922_s16 }
 0x2a4   :  { %v997_v16 = vsel %vm965_vm1, %v941_v10, %v981_v13  ;;  %v1899_v19 = vld [vmem:[#allocation2 + $0x28] sm:$0xff]  }
 0x2a5   :  { %1651 = vst [vmem:[#allocation2 + $0x38] sm:$0xff] %v1629_v14   ;;  %v1624_v17 = vpack.c.bf16 %v997_v16, %v996_v15  ;;  %p1929_p8 = por %p1928_p7, %p1927_p6 }
 0x2a6   :  { %v1898_v18 = vld [vmem:[#allocation2 + $0x20] sm:$0xff]  }
 0x2a7   :  { %1650 = vst [vmem:[#allocation2 + $0x30] sm:$0xff] %v1624_v17   ;;  %1815 = vmatprep.mubr.bf16.mxu1 %v1898_v18  ;;  %p1930_p9 = pnand %p1929_p8, %p1923_p5 }
 0x2a8   :  { %1816 = vmatmul.mubr.bf16.gmra.mxu1 %v1899_v19 }
 0x2ac   :  { %v1901_v22 = vld [vmem:[#allocation2 + $0x38] sm:$0xff]  }
 0x2ae   :  { %v1900_v21 = vld [vmem:[#allocation2 + $0x30] sm:$0xff]  }
 0x2af   :  { %1819 = vmatprep.mubr.bf16.mxu1 %v1900_v21 }
 0x2b0   :  { %1820 = vmatmul.mubr.bf16.gmra.mxu1 %v1901_v22 }
 0x358   :  { %v1809_v23 = vpop.f32.mrf.mxu0 }
 0x359   :  { %v1258_v24 = vadd.f32 %v1809_v23, %v1446_v4 }
 0x35a   :  { %v1249_v25 = vpop.f32.mrf.mxu0 }
 0x35b   :  { %1314 = vst [vmem:[#allocation6 + $0x10] sm:$0xff] %v1258_v24  ;;  %v1250_v26 = vadd.f32 %v1446_v4, %v1249_v25 }
 0x35c   :  { %v1810_v27 = vpop.f32.mrf.mxu0 }
 0x35d   :  { %1312 = vst [vmem:[#allocation6] sm:$0xff] %v1250_v26  ;;  %v1261_v28 = vadd.f32 %v1810_v27, %v1446_v4 }
 0x35e   :  { %v1252_v29 = vpop.f32.mrf.mxu0 }
 0x35f   :  { %1315 = vst [vmem:[#allocation6 + $0x18] sm:$0xff] %v1261_v28  ;;  %v1253_v30 = vadd.f32 %v1446_v4, %v1252_v29 }
 0x360   :  { %v1813_v31 = vpop.f32.mrf.mxu1 }
 0x361   :  { %1313 = vst [vmem:[#allocation6 + $0x8] sm:$0xff] %v1253_v30  ;;  %v1274_v32 = vadd.f32 %v1813_v31, %v1446_v4 }
 0x362   :  { %v1265_v33 = vpop.f32.mrf.mxu1 }
 0x363   :  { %1318 = vst [vmem:[#allocation6 + $0x30] sm:$0xff] %v1274_v32  ;;  %v1266_v34 = vadd.f32 %v1446_v4, %v1265_v33 }
 0x364   :  { %v1814_v35 = vpop.f32.mrf.mxu1 }
 0x365   :  { %1316 = vst [vmem:[#allocation6 + $0x20] sm:$0xff] %v1266_v34  ;;  %v1277_v36 = vadd.f32 %v1814_v35, %v1446_v4 }
 0x366   :  { %v1268_v37 = vpop.f32.mrf.mxu1 }
 0x367   :  { %1319 = vst [vmem:[#allocation6 + $0x38] sm:$0xff] %v1277_v36  ;;  %v1269_v20 = vadd.f32 %v1446_v4, %v1268_v37 }
 0x368   :  { %v1817_v38 = vpop.f32.mrf.mxu1 }
 0x369   :  { %1317 = vst [vmem:[#allocation6 + $0x28] sm:$0xff] %v1269_v20  ;;  %v1290_v39 = vadd.f32 %v1817_v38, %v1446_v4 }
 0x36a   :  { %v1281_v40 = vpop.f32.mrf.mxu1 }
 0x36b   :  { %1322 = vst [vmem:[#allocation6 + $0x50] sm:$0xff] %v1290_v39  ;;  %v1282_v41 = vadd.f32 %v1446_v4, %v1281_v40 }
 0x36c   :  { %v1818_v42 = vpop.f32.mrf.mxu1 }
 0x36d   :  { %1320 = vst [vmem:[#allocation6 + $0x40] sm:$0xff] %v1282_v41  ;;  %v1293_v46 = vadd.f32 %v1818_v42, %v1446_v4 }
 0x36e   :  { %v1284_v47 = vpop.f32.mrf.mxu1 }
 0x36f   :  { %1323 = vst [vmem:[#allocation6 + $0x58] sm:$0xff] %v1293_v46  ;;  %v1285_v48 = vadd.f32 %v1446_v4, %v1284_v47 }
 0x370   :  { %v1821_v43 = vpop.f32.mrf.mxu1 }
 0x371   :  { %1321 = vst [vmem:[#allocation6 + $0x48] sm:$0xff] %v1285_v48  ;;  %v1306_v49 = vadd.f32 %v1821_v43, %v1446_v4 }
 0x372   :  { %v1297_v50 = vpop.f32.mrf.mxu1 }
 0x373   :  { %1326 = vst [vmem:[#allocation6 + $0x70] sm:$0xff] %v1306_v49  ;;  %v1298_v51 = vadd.f32 %v1446_v4, %v1297_v50 }
 0x374   :  { %v1822_v52 = vpop.f32.mrf.mxu1 }
 0x375   :  { %1324 = vst [vmem:[#allocation6 + $0x60] sm:$0xff] %v1298_v51  ;;  %v1309_v53 = vadd.f32 %v1822_v52, %v1446_v4 }
 0x376   :  { %v1300_v54 = vpop.f32.mrf.mxu1 }
 0x377   :  { %1327 = vst [vmem:[#allocation6 + $0x78] sm:$0xff] %v1309_v53  ;;  %v1301_v55 = vadd.f32 %v1446_v4, %v1300_v54 }
 0x379   :  { %1325 = vst [vmem:[#allocation6 + $0x68] sm:$0xff] %v1301_v55 }
 0x37a   :  { %1933 = shalt.err (!%p1930_p9)
}
 0x37b   :  { %s1950_s17 = smov 128   ;;  %s1951_s18 = smov 8  }
 0x37c   :  { %1339 = dma.vmem_to_hbm [thread:$0]  %s1334_s15, 2048, %s2136_s6, [#allocation5], %s1950_s17, %s1950_s17, %s1951_s18  }
 0x37d   :  { %1944 = dma.done.wait [#allocation5], 2048  }
 0x37e   :  { %1945 = vsyncadd [#allocation5], 4294965248 }
 0x37f   :  { %1343 = vsyncpa [#allocation4], 1 }
 0x380   :  { %1344 = vsyncpa [#allocation5], 1 }

</bundles_post_ra>
